<compile_context>
chip_gen: v7x
topology: tpu7x:2x2x1
jax: 0.10.0
libtpu: 0.0.40
codegen_flags: <defaults>
</compile_context>

<pallas_src>
import jax
import jax.numpy as jnp
from jax import lax
from jax.experimental import pallas as pl
from jax.experimental.pallas import tpu as pltpu


# Sized for the smallest physical VMEM (v7x: 64 MiB/TC) so the same tiling is
# safe on v5e/v6e (128 MiB) as well.
_VMEM_LIMIT_BYTES = 48 * 1024 * 1024   # explicit scoped-VMEM limit for Mosaic
_TILE_BUDGET_BYTES = 28 * 1024 * 1024  # budget used by the tile-sizing math


def _round_up(x: int, m: int) -> int:
    return ((x + m - 1) // m) * m


def _round_down(x: int, m: int) -> int:
    return (x // m) * m


def _sublane_multiple(dtype) -> int:
    nbytes = jnp.dtype(dtype).itemsize
    if nbytes >= 4:
        return 8
    if nbytes == 2:
        return 16
    return 32


def _pick_tile(rows: int, n: int, dtype, mult: int) -> int:
    """Largest tile along the parallel axis that fits the VMEM budget."""
    itemsize = jnp.dtype(dtype).itemsize
    # 2x double-buffered input + 2x output tiles (4 * itemsize) plus ~3 f32
    # temporaries inside the body (upcast, exp, scaled result) => +12 bytes.
    bytes_per_row = n * (4 * itemsize + 12)
    tile = max(_TILE_BUDGET_BYTES // max(bytes_per_row, 1), 1)
    tile = max(_round_down(tile, mult), mult)
    if rows <= mult:
        # Single full-extent block (block dim == full array dim is allowed).
        return rows
    # Don't exceed the problem; keep the edge mask on the final block only.
    tile = min(tile, _round_down(rows, mult))
    # Keep at least 2 grid steps so the 'parallel' axis can span both
    # TensorCores on v7x.
    if rows >= 2 * mult:
        tile = min(tile, _round_up(-(-rows // 2), mult))
    return max(tile, mult)


def _softmax_lanes_kernel(x_ref, o_ref):
    # (row_tile, N) tile in VMEM; numerically stable softmax along lanes.
    x = x_ref[...].astype(jnp.float32)
    m = jnp.max(x, axis=-1, keepdims=True)
    e = jnp.exp(x - m)
    s = jnp.sum(e, axis=-1, keepdims=True)
    o_ref[...] = (e * pl.reciprocal(s, approx=True)).astype(o_ref.dtype)


def _softmax_sublanes_kernel(x_ref, o_ref):
    # (N, col_tile) tile in VMEM; softmax along the sublane axis (axis=0) so
    # that the (large) B*C axis stays lane-dense for unmasked stores.
    x = x_ref[...].astype(jnp.float32)
    m = jnp.max(x, axis=0, keepdims=True)
    e = jnp.exp(x - m)
    s = jnp.sum(e, axis=0, keepdims=True)
    o_ref[...] = (e * pl.reciprocal(s, approx=True)).astype(o_ref.dtype)


def _softmax_two_pass(x2, rows, n, dtype, mult, orig_shape, chunk_cap=None):
    """Online-softmax fallback for N too large for a single VMEM block.

    Pass 1: running max / rescaled running sum over lane-sized chunks of the
            softmax axis (reduction grid axis last, accumulators in scratch).
    Pass 2: out = exp(x - m) * 1/s streamed chunk-by-chunk.
    """
    itemsize = jnp.dtype(dtype).itemsize
    # Column chunk: multiple of 128 lanes, sized so mult rows of a chunk fit
    # the VMEM budget (input+output double-buffered + f32 temporaries).
    ck = max(_round_down(_TILE_BUDGET_BYTES // (mult * (4 * itemsize + 12)), 128), 128)
    if chunk_cap is not None:
        ck = min(ck, max(_round_down(chunk_cap, 128), 128))
    if ck >= n:
        ck = n  # single full-extent chunk (no lane masking needed)
    row_tile = _pick_tile(rows, ck, dtype, mult)
    n_row_blocks = pl.cdiv(rows, row_tile)
    n_col_blocks = pl.cdiv(n, ck)
    needs_col_mask = ck * n_col_blocks != n

    def stats_kernel(x_ref, m_ref, s_ref, m_sc, s_sc):
        k = pl.program_id(1)

        @pl.when(k == 0)
        def _():
            m_sc[...] = jnp.full_like(m_sc, -jnp.inf)
            s_sc[...] = jnp.zeros_like(s_sc)

        x = x_ref[...].astype(jnp.float32)
        if needs_col_mask:
            col = k * ck + lax.broadcasted_iota(jnp.int32, x.shape, 1)
            x = jnp.where(col < n, x, -jnp.inf)  # exp(-inf)=0 in the sum
        m_new = jnp.maximum(m_sc[...], jnp.max(x, axis=-1, keepdims=True))
        s_sc[...] = (s_sc[...] * jnp.exp(m_sc[...] - m_new)
                     + jnp.sum(jnp.exp(x - m_new), axis=-1, keepdims=True))
        m_sc[...] = m_new

        @pl.when(k == pl.num_programs(1) - 1)
        def _():
            m_ref[...] = m_sc[...]
            s_ref[...] = s_sc[...]

    def normalize_kernel(x_ref, m_ref, s_ref, o_ref):
        x = x_ref[...].astype(jnp.float32)
        inv = pl.reciprocal(s_ref[...], approx=True)
        o_ref[...] = (jnp.exp(x - m_ref[...]) * inv).astype(o_ref.dtype)

    compiler_params = pltpu.CompilerParams(
        dimension_semantics=("parallel", "arbitrary"),
        vmem_limit_bytes=_VMEM_LIMIT_BYTES,
    )

    m, s = pl.pallas_call(
        stats_kernel,
        out_shape=(jax.ShapeDtypeStruct((rows, 1), jnp.float32),
                   jax.ShapeDtypeStruct((rows, 1), jnp.float32)),
        grid_spec=pltpu.PrefetchScalarGridSpec(
            num_scalar_prefetch=0,
            grid=(n_row_blocks, n_col_blocks),
            in_specs=[pl.BlockSpec((row_tile, ck), lambda i, k: (i, k))],
            out_specs=[pl.BlockSpec((row_tile, 1), lambda i, k: (i, 0)),
                       pl.BlockSpec((row_tile, 1), lambda i, k: (i, 0))],
            scratch_shapes=[pltpu.VMEM((row_tile, 1), jnp.float32),
                            pltpu.VMEM((row_tile, 1), jnp.float32)],
        ),
        compiler_params=compiler_params,
    )(x2)

    out2 = pl.pallas_call(
        normalize_kernel,
        out_shape=jax.ShapeDtypeStruct((rows, n), dtype),
        grid_spec=pltpu.PrefetchScalarGridSpec(
            num_scalar_prefetch=0,
            grid=(n_row_blocks, n_col_blocks),
            in_specs=[pl.BlockSpec((row_tile, ck), lambda i, k: (i, k)),
                      pl.BlockSpec((row_tile, 1), lambda i, k: (i, 0)),
                      pl.BlockSpec((row_tile, 1), lambda i, k: (i, 0))],
            out_specs=pl.BlockSpec((row_tile, ck), lambda i, k: (i, k)),
        ),
        compiler_params=compiler_params,
    )(x2, m, s)
    return out2.reshape(orig_shape)


def softmax_probs(res: jax.Array, *, force_two_pass: bool = False,
                  two_pass_chunk_cap: int | None = None) -> jax.Array:
    """out = softmax(flatten(res, start_dim=-2), dim=-1).view(res.shape)."""
    orig_shape = res.shape
    assert res.ndim >= 2, "needs at least 2 dims to flatten the last two"
    n = orig_shape[-2] * orig_shape[-1]
    rows = 1
    for d in orig_shape[:-2]:
        rows *= d
    if rows == 0 or n == 0:
        return res

    mult = _sublane_multiple(res.dtype)
    itemsize = jnp.dtype(res.dtype).itemsize
    x2 = res.reshape(rows, n)

    # Does a whole flattened H*W row (x mult rows) fit one VMEM block?
    single_block_ok = mult * n * (4 * itemsize + 12) <= _TILE_BUDGET_BYTES
    if force_two_pass or not single_block_ok:
        return _softmax_two_pass(x2, rows, n, res.dtype, mult, orig_shape,
                                 chunk_cap=two_pass_chunk_cap)

    compiler_params = pltpu.CompilerParams(
        dimension_semantics=("parallel",),
        vmem_limit_bytes=_VMEM_LIMIT_BYTES,
    )

    if n >= 128:
        # Lane-dense already: softmax along the last (lane) axis.
        row_tile = _pick_tile(rows, n, res.dtype, mult)
        grid = (pl.cdiv(rows, row_tile),)  # ragged edge -> masked stores
        out2 = pl.pallas_call(
            _softmax_lanes_kernel,
            out_shape=jax.ShapeDtypeStruct((rows, n), res.dtype),
            grid_spec=pltpu.PrefetchScalarGridSpec(
                num_scalar_prefetch=0,
                grid=grid,
                in_specs=[pl.BlockSpec((row_tile, n), lambda i: (i, 0))],
                out_specs=pl.BlockSpec((row_tile, n), lambda i: (i, 0)),
            ),
            compiler_params=compiler_params,
        )(x2)
        return out2.reshape(orig_shape)

    # Small spatial maps (H*W < 128): transpose so the big B*C axis is on the
    # lane axis (dense, unmasked vst) and reduce along sublanes instead.
    xt = x2.T  # (n, rows)
    col_tile = _pick_tile(rows, n, res.dtype, 128)
    if rows < 128:
        col_tile = rows  # full-extent block along the lane axis
    grid = (pl.cdiv(rows, col_tile),)
    outt = pl.pallas_call(
        _softmax_sublanes_kernel,
        out_shape=jax.ShapeDtypeStruct((n, rows), res.dtype),
        grid_spec=pltpu.PrefetchScalarGridSpec(
            num_scalar_prefetch=0,
            grid=grid,
            in_specs=[pl.BlockSpec((n, col_tile), lambda i: (0, i))],
            out_specs=pl.BlockSpec((n, col_tile), lambda i: (0, i)),
        ),
        compiler_params=compiler_params,
    )(xt)
    return outt.T.reshape(orig_shape)


if __name__ == "__main__":
    key = jax.random.PRNGKey(0)
    k1, k2, k3, k4 = jax.random.split(key, 4)

    # Main case: NCHW with H*W >= 128 -> lane-axis softmax path.
    x = jax.random.normal(k1, (2, 4, 16, 16), dtype=jnp.float32)
    out = softmax_probs(x)
    jax.block_until_ready(out)
    ref = jax.nn.softmax(x.reshape(2, 4, -1), axis=-1).reshape(x.shape)
    assert out.shape == x.shape
    assert jnp.allclose(out, ref, rtol=1e-2, atol=1e-6), "mismatch (lane path)"
    assert jnp.allclose(jnp.sum(out, axis=(-2, -1)), 1.0, atol=5e-3)

    # Small spatial map (H*W = 64 < 128) -> lane-dense transposed path.
    y = jax.random.normal(k2, (2, 4, 8, 8), dtype=jnp.float32) * 3.0
    out_y = softmax_probs(y)
    jax.block_until_ready(out_y)
    ref_y = jax.nn.softmax(y.reshape(2, 4, -1), axis=-1).reshape(y.shape)
    assert jnp.allclose(out_y, ref_y, rtol=1e-2, atol=1e-6), "mismatch (small-N)"
    assert jnp.allclose(jnp.sum(out_y, axis=(-2, -1)), 1.0, atol=5e-3)

    # Ragged row count (rows=12, tile=8, grid=2) -> exercises masked edge block.
    z = jax.random.normal(k3, (3, 4, 16, 16), dtype=jnp.float32)
    out_z = softmax_probs(z)
    jax.block_until_ready(out_z)
    ref_z = jax.nn.softmax(z.reshape(3, 4, -1), axis=-1).reshape(z.shape)
    assert jnp.allclose(out_z, ref_z, rtol=1e-2, atol=1e-6), "mismatch (ragged)"
    assert jnp.allclose(jnp.sum(out_z, axis=(-2, -1)), 1.0, atol=5e-3)

    # Two-pass (large H*W) fallback, forced with a small chunk so the reduction
    # grid axis has 2 steps and the ragged last chunk (N=160, ck=128) is masked.
    w = jax.random.normal(k4, (2, 4, 10, 16), dtype=jnp.float32) * 2.0
    out_w = softmax_probs(w, force_two_pass=True, two_pass_chunk_cap=128)
    jax.block_until_ready(out_w)
    ref_w = jax.nn.softmax(w.reshape(2, 4, -1), axis=-1).reshape(w.shape)
    assert jnp.allclose(out_w, ref_w, rtol=1e-2, atol=1e-6), "mismatch (two-pass)"
    assert jnp.allclose(jnp.sum(out_w, axis=(-2, -1)), 1.0, atol=5e-3)

    print("KERNEL_OK")
</pallas_src>

<mosaic_0001>
module attributes {stable_mosaic.version = 11 : i64} {
  func.func @_softmax_lanes_kernel(%arg0: i32, %arg1: memref<8x256xf32, #tpu.memory_space<vmem>>, %arg2: memref<8x256xf32, #tpu.memory_space<vmem>>) attributes {dimension_semantics = [#tpu.dimension_semantics<parallel>], iteration_bounds = array<i64: 1>, scalar_prefetch = 0 : i64, scratch_operands = 0 : i64, tpu.core_type = #tpu.core_type<tc>, window_params = [{transform_indices = @transform_0, window_bounds = array<i64: 8, 256>}, {transform_indices = @transform_1, window_bounds = array<i64: 8, 256>}]} {
    %c0 = arith.constant 0 : index
    %c0_0 = arith.constant 0 : index
    %0 = vector.load %arg1[%c0, %c0_0] : memref<8x256xf32, #tpu.memory_space<vmem>>, vector<8x256xf32>
    %cst = arith.constant dense<0xFF800000> : vector<8xf32>
    %1 = vector.multi_reduction <maximumf>, %0, %cst [1] : vector<8x256xf32> to vector<8xf32>
    %2 = vector.shape_cast %1 : vector<8xf32> to vector<8x1xf32>
    %3 = vector.broadcast %2 : vector<8x1xf32> to vector<8x256xf32>
    %4 = arith.subf %0, %3 : vector<8x256xf32>
    %5 = math.exp %4 : vector<8x256xf32>
    %cst_1 = arith.constant dense<0.000000e+00> : vector<8xf32>
    %6 = vector.multi_reduction <add>, %5, %cst_1 [1] : vector<8x256xf32> to vector<8xf32>
    %7 = vector.shape_cast %6 : vector<8xf32> to vector<8x1xf32>
    %8 = tpu.reciprocal %7 {approx = true} : vector<8x1xf32> -> vector<8x1xf32>
    %9 = vector.broadcast %8 : vector<8x1xf32> to vector<8x256xf32>
    %10 = arith.mulf %5, %9 : vector<8x256xf32>
    %c0_2 = arith.constant 0 : index
    %c0_3 = arith.constant 0 : index
    %11 = vector.load %arg2[%c0_2, %c0_3] : memref<8x256xf32, #tpu.memory_space<vmem>>, vector<8x256xf32>
    tpu.vector_store %arg2[%c0_2, %c0_3], %10 {strides = array<i32>} : memref<8x256xf32, #tpu.memory_space<vmem>>, vector<8x256xf32>,
    return
  }
  func.func @transform_0(%arg0: i32) -> (i32, i32) {
    %c0_i32 = arith.constant 0 : i32
    %c0_i32_0 = arith.constant 0 : i32
    return %arg0, %c0_i32 : i32, i32
  }
  func.func @transform_1(%arg0: i32) -> (i32, i32) {
    %c0_i32 = arith.constant 0 : i32
    %c0_i32_0 = arith.constant 0 : i32
    return %arg0, %c0_i32 : i32, i32
  }
}

</mosaic_0001>

<bundles_post_ra>
// kernel: tpu_custom_call.1
= control target key start
LH: loop header
LB: loop body
LE: loop exit
PB: predicated region body
PF: predicated region fallthrough
CT: control target
= control target key end

     0   :  { %6 = vsyncpa [#allocation3], 0  ;;  %s147_s0 = inlined_call_operand.hbm [shape: f32[8,256], index: 0, kind: input, shape index: {}]   ;;  %s148_s1 = inlined_call_operand.hbm [shape: f32[8,256], index: 1, kind: output, shape index: {}]  }
   0x1   :  { %7 = vsyncpa [#allocation4], 0  ;;  %s111_s6 = smov [#allocation2]   ;;  %s63_s10 = scalar_lea.hbm %s147_s0, 256 }
   0x2   :  { %s14_s7 = sshll.u32 %s111_s6, 4  ;;  %p64_p0 = scmp.ne.s32.totalorder %s147_s0, %s63_s10  ;;  %s15_s7 = int_to_ptr.vmem [resolvable:$true] %s14_s7 }
   0x3   :  { %p67_p1 = scmp.lt.u32.totalorder %s63_s10, %s147_s0 }
   0x5   :  { %p69_p2 = pnand %p67_p1, %p64_p0 }
   0x7   :  { %72 = shalt.err (!%p69_p2)
}
   0x8   :  { %s73_s15 = scalar_lea.vmem %s15_s7, 256  ;;  %p78_p4 = scmp.lt.s32.totalorder %s15_s7, %s15_s7 }
   0x9   :  { %p74_p3 = scmp.ne.s32.totalorder %s15_s7, %s73_s15  ;;  %p79_p5 = scmp.lt.s32.totalorder %s73_s15, %s73_s15 }
   0xb   :  { %p80_p6 = por %p79_p5, %p78_p4 }
   0xd   :  { %p81_p7 = pnand %p80_p6, %p74_p3 }
   0xf   :  { %84 = shalt.err (!%p81_p7)
}
  0x10   :  { %17 = dma.hbm_to_vmem [thread:$0]  %s147_s0, 256, %s15_s7, [#allocation3]  }
  0x11   :  { %107 = dma.done.wait [#allocation3], 256  }
  0x12   :  { %108 = vsyncadd [#allocation3], 4294967040  ;;  %v21_v0 = vld [vmem:[#allocation2] sm:$0xff]  ;;  %v22_v1 = vld [vmem:[#allocation2 + $0x8] sm:$0xff]  ;;  %s112_s0 = smov [#allocation5]  }
  0x13   :  { %v23_v2 = vmax.f32 %v21_v0, %v22_v1  ;;  %s46_s18 = sshll.u32 %s112_s0, 4  ;;  %s47_s18 = int_to_ptr.vmem [resolvable:$true] %s46_s18 }
  0x14   :  { %s85_s19 = scalar_lea.vmem %s47_s18, 256  ;;  %p90_p9 = scmp.lt.s32.totalorder %s47_s18, %s47_s18 }
  0x15   :  { %24 = vmax.xlane.f32.xlu0 %v23_v2  ;;  %p86_p8 = scmp.ne.s32.totalorder %s47_s18, %s85_s19  ;;  %p91_p10 = scmp.lt.s32.totalorder %s85_s19, %s85_s19 }
  0x17   :  { %p92_p11 = por %p91_p10, %p90_p9 }
  0x19   :  { %p93_p12 = pnand %p92_p11, %p86_p8 }
  0xa2   :  { %v25_v3 = vpop.xlane.xlu0 %24 }
  0xa3   :  { %v26_v4 = vsub.f32 %v21_v0, %v25_v3  ;;  %v27_v5 = vsub.f32 %v22_v1, %v25_v3 }
  0xa5   :  { %v28_v6 = vmul.f32 1.442695, %v26_v4  ;;  %v30_v7 = vmul.f32 1.442695, %v27_v5 }
  0xa7   :  { %57 = vpow2.f32 %v28_v6 }
  0xa8   :  { %59 = vpow2.f32 %v30_v7 }
  0xb1   :  { %v58_v8 = vpop.eup %57 }
  0xb2   :  { %v60_v9 = vpop.eup %59 }
  0xb3   :  { %v32_v10 = vadd.f32 %v60_v9, %v58_v8 }
  0xb5   :  { %33 = vadd.xlane.f32.xlu0 %v32_v10 }
 0x142   :  { %v34_v11 = vpop.xlane.xlu0 %33 }
 0x143   :  { %61 = vrcp.f32 %v34_v11 }
 0x14d   :  { %v62_v12 = vpop.eup %61 }
 0x14e   :  { %v36_v13 = vmul.f32 %v62_v12, %v58_v8  ;;  %v37_v14 = vmul.f32 %v62_v12, %v60_v9 }
 0x150   :  { %38 = vst [vmem:[#allocation5] sm:$0xff] %v36_v13  ;;  %39 = vst [vmem:[#allocation5 + $0x8] sm:$0xff] %v37_v14 }
 0x151   :  { %96 = shalt.err (!%p93_p12)
}
 0x152   :  { %s97_s22 = scalar_lea.hbm %s148_s1, 256 }
 0x153   :  { %p98_p13 = scmp.ne.s32.totalorder %s148_s1, %s97_s22  ;;  %p101_p0 = scmp.lt.u32.totalorder %s97_s22, %s148_s1 }
 0x155   :  { %p103_p1 = pnand %p101_p0, %p98_p13 }
 0x157   :  { %106 = shalt.err (!%p103_p1)
}
 0x158   :  { %49 = dma.vmem_to_hbm [thread:$0]  %s47_s18, 256, %s148_s1, [#allocation4]  }
 0x159   :  { %109 = dma.done.wait [#allocation4], 256  }
 0x15a   :  { %110 = vsyncadd [#allocation4], 4294967040 }
 0x15b   :  { %53 = vsyncpa [#allocation3], 1 }
 0x15c   :  { %54 = vsyncpa [#allocation4], 1 }

</bundles_post_ra>
